<compile_context>
chip_gen: v7x
topology: tpu7x:2x2x1
jax: 0.10.0
libtpu: 0.0.40
codegen_flags: <defaults>
</compile_context>

<pallas_src>
import jax
import jax.numpy as jnp
from jax.experimental import pallas as pl
from jax.experimental.pallas import tpu as pltpu

LANE = 128  # TPU vreg lane width; pad OUT to this for lane-dense stores


def linear_kernel(x_ref, w_ref, b_ref, o_ref):
    # Rank-1 (K=1) linear: pure VPU broadcast multiply-add, no MXU pass.
    # (B, 1) * (1, OUT_PAD) + (1, OUT_PAD) -> (B, OUT_PAD)
    o_ref[...] = x_ref[...] * w_ref[...] + b_ref[...]


def my_transform_forward(x, w_pt, b):
    """Forward of nn.Linear(1, 50): x @ W.T + b.

    x: (B, 1) float32, w_pt: (OUT, 1) float32 (PyTorch layout), b: (OUT,) float32.
    Returns (B, OUT) float32.
    """
    B, IN = x.shape
    OUT = w_pt.shape[0]
    assert IN == 1 and w_pt.shape[1] == IN

    # Glue (plain JAX): transpose weight to (IN, OUT) and zero-pad the lane
    # (output-feature) dimension up to a full 128-lane multiple so the kernel
    # performs unmasked, lane-dense stores.
    out_pad = ((OUT + LANE - 1) // LANE) * LANE
    w_t = jnp.zeros((1, out_pad), jnp.float32).at[:, :OUT].set(w_pt.T)
    b2d = jnp.zeros((1, out_pad), jnp.float32).at[:, :OUT].set(b.reshape(1, OUT))

    out_padded = pl.pallas_call(
        linear_kernel,
        out_shape=jax.ShapeDtypeStruct((B, out_pad), jnp.float32),
        # Gridless single invocation: whole (tiny) operands live in VMEM.
        in_specs=[
            pl.BlockSpec(memory_space=pltpu.MemorySpace.VMEM),
            pl.BlockSpec(memory_space=pltpu.MemorySpace.VMEM),
            pl.BlockSpec(memory_space=pltpu.MemorySpace.VMEM),
        ],
        out_specs=pl.BlockSpec(memory_space=pltpu.MemorySpace.VMEM),
        # Tiny, accurate cost hint so XLA does not block overlap around this call.
        cost_estimate=pl.CostEstimate(
            flops=2 * B * out_pad,
            transcendentals=0,
            bytes_accessed=(B * IN + 2 * out_pad + B * out_pad) * 4,
        ),
    )(x, w_t, b2d)

    # Slice the padded lanes back off (plain JAX).
    return out_padded[:, :OUT]


if __name__ == "__main__":
    input_size = 1
    output_size = 50
    batch = 8

    key = jax.random.PRNGKey(0)
    kx, kw, kb = jax.random.split(key, 3)

    # Deterministic parameter init (matches nn.Linear's uniform(-1/sqrt(in), 1/sqrt(in)) range).
    bound = 1.0 / (input_size ** 0.5)
    w_pt = jax.random.uniform(kw, (output_size, input_size), jnp.float32, -bound, bound)  # (OUT, IN)
    b = jax.random.uniform(kb, (output_size,), jnp.float32, -bound, bound)

    x = jax.random.normal(kx, (batch, input_size), jnp.float32)

    out = my_transform_forward(x, w_pt, b)
    out = jax.block_until_ready(out)

    # Reference check against plain JAX (same math as PyTorch forward).
    ref = x @ w_pt.T + b
    assert out.shape == (batch, output_size)
    assert jnp.allclose(out, ref, atol=1e-5, rtol=1e-5)

    print("KERNEL_OK")
</pallas_src>

<mosaic_0001>
module attributes {stable_mosaic.version = 11 : i64} {
  func.func @linear_kernel(%arg0: memref<8x1xf32, #tpu.memory_space<vmem>>, %arg1: memref<1x128xf32, #tpu.memory_space<vmem>>, %arg2: memref<1x128xf32, #tpu.memory_space<vmem>>, %arg3: memref<8x128xf32, #tpu.memory_space<vmem>>) attributes {dimension_semantics = [], scalar_prefetch = 0 : i64, scratch_operands = 0 : i64, tpu.core_type = #tpu.core_type<tc>} {
    %c0 = arith.constant 0 : index
    %c0_0 = arith.constant 0 : index
    %0 = vector.load %arg0[%c0, %c0_0] : memref<8x1xf32, #tpu.memory_space<vmem>>, vector<8x1xf32>
    %c0_1 = arith.constant 0 : index
    %c0_2 = arith.constant 0 : index
    %1 = vector.load %arg1[%c0_1, %c0_2] : memref<1x128xf32, #tpu.memory_space<vmem>>, vector<1x128xf32>
    %2 = vector.broadcast %0 : vector<8x1xf32> to vector<8x128xf32>
    %3 = vector.broadcast %1 : vector<1x128xf32> to vector<8x128xf32>
    %4 = arith.mulf %2, %3 : vector<8x128xf32>
    %c0_3 = arith.constant 0 : index
    %c0_4 = arith.constant 0 : index
    %5 = vector.load %arg2[%c0_3, %c0_4] : memref<1x128xf32, #tpu.memory_space<vmem>>, vector<1x128xf32>
    %6 = vector.broadcast %5 : vector<1x128xf32> to vector<8x128xf32>
    %7 = arith.addf %4, %6 : vector<8x128xf32>
    %c0_5 = arith.constant 0 : index
    %c0_6 = arith.constant 0 : index
    %8 = vector.load %arg3[%c0_5, %c0_6] : memref<8x128xf32, #tpu.memory_space<vmem>>, vector<8x128xf32>
    tpu.vector_store %arg3[%c0_5, %c0_6], %7 {strides = array<i32>} : memref<8x128xf32, #tpu.memory_space<vmem>>, vector<8x128xf32>,
    return
  }
}

</mosaic_0001>

<bundles_post_ra>
// kernel: tpu_custom_call.1
= control target key start
LH: loop header
LB: loop body
LE: loop exit
PB: predicated region body
PF: predicated region fallthrough
CT: control target
= control target key end

     0   :  { %s124_s0 = inlined_call_operand.vmem [shape: f32[8,1], index: 0, kind: input, shape index: {}]   ;;  %s125_s1 = inlined_call_operand.vmem [shape: f32[1,128], index: 1, kind: input, shape index: {}]   ;;  %s126_s2 = inlined_call_operand.vmem [shape: f32[1,128], index: 2, kind: input, shape index: {}]   ;;  %s127_s3 = inlined_call_operand.hbm [shape: f32[8,128], index: 3, kind: output, shape index: {}]  }
   0x1   :  { %v15_v0 = vld [vmem:[%s124_s0] sm:$0xff] }
   0x2   :  { %8 = vsyncpa [#allocation3], 0  ;;  %v81_v1 = vmov 0   ;;  %v52_v2 = vld [vmem:[%s125_s1] ss:$0 sm:$0xff]  ;;  %s82_s18 = smov [#allocation2]  }
   0x3   :  { %56 = vset.pattern.permute.xlu0 %v81_v1  ;;  %v53_v4 = vld [vmem:[%s126_s2] ss:$0 sm:$0xff]  ;;  %s44_s19 = sshll.u32 %s82_s18, 4  ;;  %s45_s19 = int_to_ptr.vmem [resolvable:$true] %s44_s19 }
   0x4   :  { %19 = vperm.xlu0 %56, %v15_v0   ;;  %s57_s0 = scalar_lea.vmem %s45_s19, 128  ;;  %p62_p1 = scmp.lt.s32.totalorder %s45_s19, %s45_s19 }
   0x5   :  { %p58_p0 = scmp.ne.s32.totalorder %s45_s19, %s57_s0  ;;  %p63_p2 = scmp.lt.s32.totalorder %s57_s0, %s57_s0 }
   0x7   :  { %p64_p3 = por %p63_p2, %p62_p1 }
   0x9   :  { %p65_p4 = pnand %p64_p3, %p58_p0 }
  0x83   :  { %v20_v3 = vpop.permute.xlu0 %19 }
  0x84   :  { %v28_v5 = vmul.f32 %v52_v2, %v20_v3 }
  0x86   :  { %v36_v6 = vadd.f32 %v53_v4, %v28_v5 }
  0x88   :  { %37 = vst [vmem:[#allocation2] sm:$0xff] %v36_v6 }
  0x89   :  { %68 = shalt.err (!%p65_p4)
}
  0x8a   :  { %s69_s21 = scalar_lea.hbm %s127_s3, 128 }
  0x8b   :  { %p70_p5 = scmp.ne.s32.totalorder %s127_s3, %s69_s21  ;;  %p73_p6 = scmp.lt.u32.totalorder %s69_s21, %s127_s3 }
  0x8d   :  { %p75_p7 = pnand %p73_p6, %p70_p5 }
  0x8f   :  { %78 = shalt.err (!%p75_p7)
}
  0x90   :  { %47 = dma.vmem_to_hbm [thread:$0]  %s45_s19, 128, %s127_s3, [#allocation3]  }
  0x91   :  { %79 = dma.done.wait [#allocation3], 128  }
  0x92   :  { %80 = vsyncadd [#allocation3], 4294967168 }
  0x93   :  { %51 = vsyncpa [#allocation3], 1 }

</bundles_post_ra>
